<compile_context>
chip_gen: v7x
topology: tpu7x:2x2x1
jax: 0.10.0
libtpu: 0.0.40
codegen_flags: <defaults>
</compile_context>

<pallas_src>
import functools

import jax
import jax.numpy as jnp
from jax.experimental import pallas as pl
from jax.experimental.pallas import tpu as pltpu


def _round_up(n, m):
    return ((n + m - 1) // m) * m


# ----------------------------- Pallas kernel --------------------------------
def task_decoder_kernel(x_ref, w_ref, b_ref, out_ref, *, colw):
    """x:(bt, P) f32   w:(P, 3P) bf16 packed [W1|W2|Whead] (block-diag folded)
    b:(1, 3P) f32      out:(bt, P) f32 lane-dense slab (unfolded in wrapper).

    All weight slices are full 128-lane-aligned (P, P) blocks, so every matmul
    is a dense MXU tile and every store is an unmasked lane-dense vst.
    """
    P = colw
    f32 = jnp.float32
    bf16 = jnp.bfloat16

    x = x_ref[...].astype(bf16)

    # layer 1: ReLU(x @ W1 + b1)      (block-diag over `fold` batch rows)
    h = jnp.dot(x, w_ref[:, :P], preferred_element_type=f32)
    h = jnp.maximum(h + b_ref[:, :P], 0.0)

    # layer 2: ReLU(h @ W2 + b2)
    h = jnp.dot(h.astype(bf16), w_ref[:, P:2 * P], preferred_element_type=f32)
    h = jnp.maximum(h + b_ref[:, P:2 * P], 0.0)

    # fused heads: [next_state | reward] = h @ [Wns | Wr] + [bns | br]
    out = jnp.dot(h.astype(bf16), w_ref[:, 2 * P:3 * P],
                  preferred_element_type=f32)
    out_ref[...] = out + b_ref[:, 2 * P:3 * P]


# -------------------------- parameter preparation ---------------------------
def _spectral_normalize(W):
    # torch spectral_norm divides W by its largest singular value; use exact SVD.
    # TODO(synk): torch re-estimates sigma via power iteration every forward;
    # for frozen init weights the exact SVD is equivalent and deterministic.
    sigma = jnp.linalg.svd(W, compute_uv=False)[0]
    return W / sigma


def _linear_init(key, fan_in, fan_out):
    # torch.nn.Linear default init: U(-1/sqrt(fan_in), 1/sqrt(fan_in))
    kw, kb = jax.random.split(key)
    bound = 1.0 / (fan_in ** 0.5)
    W = jax.random.uniform(kw, (fan_out, fan_in), jnp.float32, -bound, bound)
    b = jax.random.uniform(kb, (fan_out,), jnp.float32, -bound, bound)
    return W, b


def init_task_decoder_params(key, state_space, action_space, latent_dim, hidden_dim):
    k1, k2, k3, k4 = jax.random.split(key, 4)
    d_in = latent_dim + state_space + action_space
    W1, b1 = _linear_init(k1, d_in, hidden_dim)
    W2, b2 = _linear_init(k2, hidden_dim, hidden_dim)
    Wns, bns = _linear_init(k3, hidden_dim, state_space)
    Wr, br = _linear_init(k4, hidden_dim, 1)
    return dict(
        W1=_spectral_normalize(W1), b1=b1,
        W2=_spectral_normalize(W2), b2=b2,
        Wns=_spectral_normalize(Wns), bns=bns,
        Wr=_spectral_normalize(Wr), br=br,
    )


def pack_params(params, *, state_space, hidden_dim):
    """One-time prep: transpose to (in, out), fuse the two heads, choose a
    batch fold factor, and pack block-diagonal bf16 weights / f32 biases into
    two lane-aligned arrays with square (P, P) layer blocks."""
    W1T = jnp.asarray(params["W1"]).T                        # (d_in, H)
    W2T = jnp.asarray(params["W2"]).T                        # (H, H)
    WheadT = jnp.concatenate(
        [jnp.asarray(params["Wns"]).T, jnp.asarray(params["Wr"]).T], axis=1
    )                                                        # (H, s_out)
    bhead = jnp.concatenate(
        [jnp.asarray(params["bns"]), jnp.asarray(params["br"])])  # (s_out,)

    d_in = W1T.shape[0]
    H = hidden_dim
    s_out = state_space + 1

    # Fold as many independent batch rows per kernel row as fit in 128 lanes.
    maxdim = max(d_in, H, s_out)
    fold = max(1, 128 // maxdim)
    P = _round_up(fold * maxdim, 128)        # square, 128-lane-aligned blocks

    w = jnp.zeros((P, 3 * P), jnp.float32)
    b = jnp.zeros((1, 3 * P), jnp.float32)
    for j in range(fold):
        w = w.at[j * d_in:(j + 1) * d_in, j * H:(j + 1) * H].set(W1T)
        w = w.at[j * H:(j + 1) * H, P + j * H:P + (j + 1) * H].set(W2T)
        w = w.at[j * H:(j + 1) * H,
                 2 * P + j * s_out:2 * P + (j + 1) * s_out].set(WheadT)
        b = b.at[0, j * H:(j + 1) * H].set(jnp.asarray(params["b1"]))
        b = b.at[0, P + j * H:P + (j + 1) * H].set(jnp.asarray(params["b2"]))
        b = b.at[0, 2 * P + j * s_out:2 * P + (j + 1) * s_out].set(bhead)

    return dict(w=w.astype(jnp.bfloat16), b=b,
                d_in=d_in, fold=fold, colw=P)


# ------------------------------ forward wrapper ------------------------------
def pick_batch_tile(B, fold, cap=2048):
    """Folded-row tile. Capped so VMEM blocks stay small for any B, padded up
    to a multiple of 8, and halved for large B so the grid has >= 2 steps
    (v7x: lets the 'parallel' axis split across both TensorCores)."""
    b_fold = pl.cdiv(B, fold)
    bt = min(cap, _round_up(b_fold, 8))
    if b_fold >= 512:
        bt = min(bt, _round_up(pl.cdiv(b_fold, 2), 8))
    return max(bt, 8)


@functools.partial(
    jax.jit,
    static_argnames=("d_in", "state_space", "fold", "colw", "batch_tile"))
def task_decoder_forward(w_packed, b_packed, latent_state_action, *,
                         d_in, state_space, fold, colw, batch_tile):
    B = latent_state_action.shape[0]
    s_out = state_space + 1
    P = colw
    bt = batch_tile

    # pad-to-multiple + cdiv grid (no giant single-block fallback)
    b_fold = pl.cdiv(B, fold)
    grid_n = pl.cdiv(b_fold, bt)
    b_fold_pad = grid_n * bt
    B_pad = b_fold_pad * fold

    # fold `fold` batch rows per kernel row, lane-pad to P (zero cols hit
    # zero weight rows -> math unchanged)
    x = jnp.pad(latent_state_action, ((0, B_pad - B), (0, 0)))
    x = x.reshape(b_fold_pad, fold * d_in)
    x = jnp.pad(x, ((0, 0), (0, P - fold * d_in)))

    kernel = functools.partial(task_decoder_kernel, colw=P)

    out = pl.pallas_call(
        kernel,
        out_shape=jax.ShapeDtypeStruct((b_fold_pad, P), jnp.float32),
        grid=(grid_n,),
        in_specs=[
            pl.BlockSpec((bt, P), lambda i: (i, 0)),           # folded x tile
            pl.BlockSpec((P, 3 * P), lambda i: (0, 0)),        # all weights (bf16)
            pl.BlockSpec((1, 3 * P), lambda i: (0, 0)),        # all biases (f32)
        ],
        out_specs=pl.BlockSpec((bt, P), lambda i: (i, 0)),     # lane-dense slab
        compiler_params=pltpu.CompilerParams(
            dimension_semantics=("parallel",)),
    )(x, w_packed, b_packed)

    # unfold: (b_fold_pad, P) -> take fold*s_out lanes -> (B_pad, s_out) -> (B, s_out)
    out = out[:, :fold * s_out].reshape(B_pad, s_out)[:B]
    next_state = out[:, :state_space]
    reward = out[:, state_space:]
    return next_state, reward


# --------------------------------- demo --------------------------------------
if __name__ == "__main__":
    state_space = 12
    action_space = 4
    latent_dim = 8
    hidden_dim = 32
    batch = 8

    key = jax.random.PRNGKey(0)
    kp, kx = jax.random.split(key)

    params = init_task_decoder_params(kp, state_space, action_space,
                                      latent_dim, hidden_dim)
    packed = pack_params(params, state_space=state_space, hidden_dim=hidden_dim)

    d_in = latent_dim + state_space + action_space
    latent_state_action = jax.random.normal(kx, (batch, d_in), jnp.float32)

    bt = pick_batch_tile(batch, packed["fold"])
    next_state, reward = task_decoder_forward(
        packed["w"], packed["b"], latent_state_action,
        d_in=packed["d_in"], state_space=state_space,
        fold=packed["fold"], colw=packed["colw"], batch_tile=bt)
    jax.block_until_ready((next_state, reward))

    # Pure-JAX f32 reference check (kernel uses bf16 weights -> loose tol).
    relu = jax.nn.relu
    x = relu(latent_state_action @ params["W1"].T + params["b1"])
    x = relu(x @ params["W2"].T + params["b2"])
    ns_ref = x @ params["Wns"].T + params["bns"]
    r_ref = x @ params["Wr"].T + params["br"]

    assert next_state.shape == (batch, state_space)
    assert reward.shape == (batch, 1)
    assert jnp.allclose(next_state, ns_ref, atol=5e-2, rtol=5e-2)
    assert jnp.allclose(reward, r_ref, atol=5e-2, rtol=5e-2)

    print("KERNEL_OK")
</pallas_src>

<mosaic_0001>
module attributes {stable_mosaic.version = 11 : i64} {
  func.func @task_decoder_kernel(%arg0: i32, %arg1: memref<8x128xf32, #tpu.memory_space<vmem>>, %arg2: memref<128x384xbf16, #tpu.memory_space<vmem>>, %arg3: memref<1x384xf32, #tpu.memory_space<vmem>>, %arg4: memref<8x128xf32, #tpu.memory_space<vmem>>) attributes {dimension_semantics = [#tpu.dimension_semantics<parallel>], iteration_bounds = array<i64: 1>, scalar_prefetch = 0 : i64, scratch_operands = 0 : i64, tpu.core_type = #tpu.core_type<tc>, window_params = [{transform_indices = @transform_0, window_bounds = array<i64: 8, 128>}, {pipeline_mode = #tpu.pipeline_mode<synchronous>, transform_indices = @transform_1, window_bounds = array<i64: 128, 384>}, {pipeline_mode = #tpu.pipeline_mode<synchronous>, transform_indices = @transform_2, window_bounds = array<i64: 1, 384>}, {transform_indices = @transform_3, window_bounds = array<i64: 8, 128>}]} {
    %c0 = arith.constant 0 : index
    %c0_0 = arith.constant 0 : index
    %0 = vector.load %arg1[%c0, %c0_0] : memref<8x128xf32, #tpu.memory_space<vmem>>, vector<8x128xf32>
    %1 = arith.truncf %0 : vector<8x128xf32> to vector<8x128xbf16>
    %c0_1 = arith.constant 0 : index
    %c0_2 = arith.constant 0 : index
    %2 = vector.load %arg2[%c0_1, %c0_2] : memref<128x384xbf16, #tpu.memory_space<vmem>>, vector<128x128xbf16>
    %cst = arith.constant dense<0.000000e+00> : vector<8x128xf32>
    %3 = tpu.matmul %1, %2, %cst {dimension_numbers = #tpu.dot_dimension_numbers<[1], [0], [0], [1], [0, 0, 1, 1], [], []>} : vector<8x128xbf16>, vector<128x128xbf16>, vector<8x128xf32> -> vector<8x128xf32>
    %c0_3 = arith.constant 0 : index
    %c0_4 = arith.constant 0 : index
    %4 = vector.load %arg3[%c0_3, %c0_4] : memref<1x384xf32, #tpu.memory_space<vmem>>, vector<1x128xf32>
    %5 = vector.broadcast %4 : vector<1x128xf32> to vector<8x128xf32>
    %6 = arith.addf %3, %5 : vector<8x128xf32>
    %cst_5 = arith.constant 0.000000e+00 : f32
    %7 = vector.broadcast %cst_5 : f32 to vector<8x128xf32>
    %8 = arith.maximumf %6, %7 : vector<8x128xf32>
    %9 = arith.truncf %8 : vector<8x128xf32> to vector<8x128xbf16>
    %c0_6 = arith.constant 0 : index
    %c128 = arith.constant 128 : index
    %10 = vector.load %arg2[%c0_6, %c128] : memref<128x384xbf16, #tpu.memory_space<vmem>>, vector<128x128xbf16>
    %cst_7 = arith.constant dense<0.000000e+00> : vector<8x128xf32>
    %11 = tpu.matmul %9, %10, %cst_7 {dimension_numbers = #tpu.dot_dimension_numbers<[1], [0], [0], [1], [0, 0, 1, 1], [], []>} : vector<8x128xbf16>, vector<128x128xbf16>, vector<8x128xf32> -> vector<8x128xf32>
    %c0_8 = arith.constant 0 : index
    %c128_9 = arith.constant 128 : index
    %12 = vector.load %arg3[%c0_8, %c128_9] : memref<1x384xf32, #tpu.memory_space<vmem>>, vector<1x128xf32>
    %13 = vector.broadcast %12 : vector<1x128xf32> to vector<8x128xf32>
    %14 = arith.addf %11, %13 : vector<8x128xf32>
    %cst_10 = arith.constant 0.000000e+00 : f32
    %15 = vector.broadcast %cst_10 : f32 to vector<8x128xf32>
    %16 = arith.maximumf %14, %15 : vector<8x128xf32>
    %17 = arith.truncf %16 : vector<8x128xf32> to vector<8x128xbf16>
    %c0_11 = arith.constant 0 : index
    %c256 = arith.constant 256 : index
    %18 = vector.load %arg2[%c0_11, %c256] : memref<128x384xbf16, #tpu.memory_space<vmem>>, vector<128x128xbf16>
    %cst_12 = arith.constant dense<0.000000e+00> : vector<8x128xf32>
    %19 = tpu.matmul %17, %18, %cst_12 {dimension_numbers = #tpu.dot_dimension_numbers<[1], [0], [0], [1], [0, 0, 1, 1], [], []>} : vector<8x128xbf16>, vector<128x128xbf16>, vector<8x128xf32> -> vector<8x128xf32>
    %c0_13 = arith.constant 0 : index
    %c256_14 = arith.constant 256 : index
    %20 = vector.load %arg3[%c0_13, %c256_14] : memref<1x384xf32, #tpu.memory_space<vmem>>, vector<1x128xf32>
    %21 = vector.broadcast %20 : vector<1x128xf32> to vector<8x128xf32>
    %22 = arith.addf %19, %21 : vector<8x128xf32>
    %c0_15 = arith.constant 0 : index
    %c0_16 = arith.constant 0 : index
    %23 = vector.load %arg4[%c0_15, %c0_16] : memref<8x128xf32, #tpu.memory_space<vmem>>, vector<8x128xf32>
    tpu.vector_store %arg4[%c0_15, %c0_16], %22 {strides = array<i32>} : memref<8x128xf32, #tpu.memory_space<vmem>>, vector<8x128xf32>,
    return
  }
  func.func @transform_0(%arg0: i32) -> (i32, i32) {
    %c0_i32 = arith.constant 0 : i32
    %c0_i32_0 = arith.constant 0 : i32
    return %arg0, %c0_i32 : i32, i32
  }
  func.func @transform_1(%arg0: i32) -> (i32, i32) {
    %c0_i32 = arith.constant 0 : i32
    %c0_i32_0 = arith.constant 0 : i32
    %c0_i32_1 = arith.constant 0 : i32
    return %c0_i32, %c0_i32_0 : i32, i32
  }
  func.func @transform_2(%arg0: i32) -> (i32, i32) {
    %c0_i32 = arith.constant 0 : i32
    %c0_i32_0 = arith.constant 0 : i32
    %c0_i32_1 = arith.constant 0 : i32
    return %c0_i32, %c0_i32_0 : i32, i32
  }
  func.func @transform_3(%arg0: i32) -> (i32, i32) {
    %c0_i32 = arith.constant 0 : i32
    %c0_i32_0 = arith.constant 0 : i32
    return %arg0, %c0_i32 : i32, i32
  }
}

</mosaic_0001>

<bundles_post_ra>
// kernel: task_decoder_forward.1
= control target key start
LH: loop header
LB: loop body
LE: loop exit
PB: predicated region body
PF: predicated region fallthrough
CT: control target
= control target key end

     0   :  { %8 = vsyncpa [#allocation3], 0  ;;  %s541_s12 = smov [#allocation2]   ;;  %s623_s0 = inlined_call_operand.vmem [shape: f32[8,128], index: 0, kind: input, shape index: {}]   ;;  %s624_s1 = inlined_call_operand.hbm [shape: bf16[128,384], index: 1, kind: input, shape index: {}]   ;;  %s625_s2 = inlined_call_operand.vmem [shape: f32[1,384], index: 2, kind: input, shape index: {}]   ;;  %s626_s3 = inlined_call_operand.vmem [shape: f32[8,128], index: 3, kind: output, shape index: {}]  }
   0x1   :  { %s16_s13 = sshll.u32 %s541_s12, 4  ;;  %s517_s16 = scalar_lea.hbm %s624_s1, 3072  ;;  %s17_s13 = int_to_ptr.vmem [resolvable:$true] %s16_s13 }
   0x2   :  { %p518_p0 = scmp.ne.s32.totalorder %s624_s1, %s517_s16  ;;  %p521_p1 = scmp.lt.u32.totalorder %s517_s16, %s624_s1 }
   0x4   :  { %p523_p2 = pnand %p521_p1, %p518_p0 }
   0x6   :  { %526 = shalt.err (!%p523_p2)
}
   0x7   :  { %s527_s21 = scalar_lea.vmem %s17_s13, 3072  ;;  %p532_p4 = scmp.lt.s32.totalorder %s17_s13, %s17_s13 }
   0x8   :  { %p528_p3 = scmp.ne.s32.totalorder %s17_s13, %s527_s21  ;;  %p533_p5 = scmp.lt.s32.totalorder %s527_s21, %s527_s21 }
   0xa   :  { %p534_p6 = por %p533_p5, %p532_p4 }
   0xc   :  { %p535_p7 = pnand %p534_p6, %p528_p3 }
   0xe   :  { %538 = shalt.err (!%p535_p7)
}
   0xf   :  { %s542_s22 = smov 192   ;;  %s543_s23 = smov 12  }
  0x10   :  { %22 = dma.hbm_to_vmem [thread:$0]  %s624_s1, 3072, %s17_s13, [#allocation3], %s542_s22, %s542_s22, %s543_s23  }
  0x11   :  { %539 = dma.done.wait [#allocation3], 3072  }
  0x12   :  { %540 = vsyncadd [#allocation3], 4294964224  ;;  %v544_v0 = vmov 0.0   ;;  %vm545_vm0 = vmmov 0   ;;  %v493_v1 = vld [vmem:[#allocation2] ss:$12 sps:$4 sm:$0xff]  }
  0x13   :  { %428 = vmatprep.subr.bf16.mxu0 %v544_v0  ;;  %444 = vmatprep.mubr.msk.bf16.mxu0 %vm545_vm0, %v544_v0  ;;  %v494_v2 = vld [vmem:[#allocation2 + $0x18] ss:$12 sps:$4 sm:$0xff]   ;;  %v495_v3 = vld [vmem:[#allocation2 + $0x30] ss:$12 sps:$4 sm:$0xff]   ;;  %v496_v5 = vld [vmem:[#allocation2 + $0x48] ss:$12 sps:$4 sm:$0xff]  }
  0x14   :  { %448 = vmatprep.subr.bf16.mxu1 %v544_v0  ;;  %464 = vmatprep.mubr.msk.bf16.mxu1 %vm545_vm0, %v544_v0  ;;  %v501_v4 = vld [vmem:[#allocation2 + $0x4] ss:$12 sps:$4 sm:$0xff]   ;;  %v502_v6 = vld [vmem:[#allocation2 + $0x1c] ss:$12 sps:$4 sm:$0xff]   ;;  %v497_v7 = vld [vmem:[#allocation2 + $0x60] ss:$12 sps:$4 sm:$0xff]  }
  0x15   :  { %429 = vmatpush3.bf16.msra.mxu0 %v493_v1  ;;  %449 = vmatpush3.bf16.msra.mxu1 %v501_v4  ;;  %v503_v8 = vld [vmem:[#allocation2 + $0x34] ss:$12 sps:$4 sm:$0xff]   ;;  %v498_v9 = vld [vmem:[#allocation2 + $0x78] ss:$12 sps:$4 sm:$0xff]   ;;  %v499_v11 = vld [vmem:[#allocation2 + $0x90] ss:$12 sps:$4 sm:$0xff]  }
  0x16   :  { %430 = vmatprep.subr.bf16.mxu0 %v544_v0  ;;  %450 = vmatprep.subr.bf16.mxu1 %v544_v0  ;;  %v504_v10 = vld [vmem:[#allocation2 + $0x4c] ss:$12 sps:$4 sm:$0xff]   ;;  %v505_v12 = vld [vmem:[#allocation2 + $0x64] ss:$12 sps:$4 sm:$0xff]   ;;  %v500_v13 = vld [vmem:[#allocation2 + $0xa8] ss:$12 sps:$4 sm:$0xff]  }
  0x17   :  { %v29_v14 = vld [vmem:[%s623_s0] sm:$0xff]  ;;  %v506_v15 = vld [vmem:[#allocation2 + $0x7c] ss:$12 sps:$4 sm:$0xff]   ;;  %v508_v18 = vld [vmem:[#allocation2 + $0xac] ss:$12 sps:$4 sm:$0xff]  }
  0x18   :  { %v30_v16 = vpack.c.bf16 %v29_v14, %v29_v14  ;;  %v507_v17 = vld [vmem:[#allocation2 + $0x94] ss:$12 sps:$4 sm:$0xff]   ;;  %v511_v21 = vld [vmem:[#allocation2 + $0x38] ss:$12 sps:$4 sm:$0xff]   ;;  %v512_v22 = vld [vmem:[#allocation2 + $0x50] ss:$12 sps:$4 sm:$0xff]  }
  0x19   :  { %431 = vmatpush3.bf16.msra.mxu0 %v494_v2  ;;  %451 = vmatpush3.bf16.msra.mxu1 %v502_v6  ;;  %v509_v19 = vld [vmem:[#allocation2 + $0x8] ss:$12 sps:$4 sm:$0xff]   ;;  %v510_v20 = vld [vmem:[#allocation2 + $0x20] ss:$12 sps:$4 sm:$0xff]   ;;  %v515_v33 = vld [vmem:[#allocation2 + $0x98] ss:$12 sps:$4 sm:$0xff]  }
  0x1a   :  { %432 = vmatprep.subr.bf16.mxu0 %v544_v0  ;;  %452 = vmatprep.subr.bf16.mxu1 %v544_v0  ;;  %v513_v23 = vld [vmem:[#allocation2 + $0x68] ss:$12 sps:$4 sm:$0xff]   ;;  %v514_v24 = vld [vmem:[#allocation2 + $0x80] ss:$12 sps:$4 sm:$0xff]   ;;  %v516_v34 = vld [vmem:[#allocation2 + $0xb0] ss:$12 sps:$4 sm:$0xff]  }
  0x1b   :  { %v374_v25 = vld [vmem:[%s625_s2] ss:$0 sm:$0xff]  ;;  %v383_v35 = vld [vmem:[%s625_s2 + $0x1] ss:$0 sm:$0xff]  ;;  %v392_v43 = vld [vmem:[%s625_s2 + $0x2] ss:$0 sm:$0xff] }
  0x1d   :  { %433 = vmatpush3.bf16.msra.mxu0 %v495_v3  ;;  %453 = vmatpush3.bf16.msra.mxu1 %v503_v8 }
  0x1e   :  { %434 = vmatprep.subr.bf16.mxu0 %v544_v0  ;;  %454 = vmatprep.subr.bf16.mxu1 %v544_v0 }
  0x21   :  { %435 = vmatpush3.bf16.msra.mxu0 %v496_v5  ;;  %455 = vmatpush3.bf16.msra.mxu1 %v504_v10 }
  0x22   :  { %436 = vmatprep.subr.bf16.mxu0 %v544_v0  ;;  %456 = vmatprep.subr.bf16.mxu1 %v544_v0 }
  0x25   :  { %437 = vmatpush3.bf16.msra.mxu0 %v497_v7  ;;  %457 = vmatpush3.bf16.msra.mxu1 %v505_v12 }
  0x26   :  { %438 = vmatprep.subr.bf16.mxu0 %v544_v0  ;;  %458 = vmatprep.subr.bf16.mxu1 %v544_v0 }
  0x29   :  { %439 = vmatpush3.bf16.msra.mxu0 %v498_v9  ;;  %459 = vmatpush3.bf16.msra.mxu1 %v506_v15 }
  0x2a   :  { %440 = vmatprep.subr.bf16.mxu0 %v544_v0  ;;  %460 = vmatprep.subr.bf16.mxu1 %v544_v0 }
  0x2d   :  { %441 = vmatpush3.bf16.msra.mxu0 %v499_v11  ;;  %461 = vmatpush3.bf16.msra.mxu1 %v507_v17 }
  0x2e   :  { %442 = vmatprep.subr.bf16.mxu0 %v544_v0  ;;  %462 = vmatprep.subr.bf16.mxu1 %v544_v0 }
  0x31   :  { %443 = vmatpush3.bf16.msra.mxu0 %v500_v13  ;;  %463 = vmatpush3.bf16.msra.mxu1 %v508_v18 }
  0x32   :  { %468 = vmatprep.subr.bf16.mxu0 %v544_v0 }
  0x34   :  { %445 = vmatmul.mubr.bf16.vlgmr.msra.gmra.mrb[0].mxu0 %v30_v16 }
  0x35   :  { %484 = vmatprep.mubr.msk.bf16.mxu0 %vm545_vm0, %v544_v0  ;;  %469 = vmatpush3.bf16.msra.mxu0 %v509_v19 }
  0x36   :  { %470 = vmatprep.subr.bf16.mxu0 %v544_v0 }
  0x39   :  { %471 = vmatpush3.bf16.msra.mxu0 %v510_v20 }
  0x3a   :  { %472 = vmatprep.subr.bf16.mxu0 %v544_v0 }
  0x3d   :  { %473 = vmatpush3.bf16.msra.mxu0 %v511_v21 }
  0x3e   :  { %474 = vmatprep.subr.bf16.mxu0 %v544_v0 }
  0x41   :  { %475 = vmatpush3.bf16.msra.mxu0 %v512_v22 }
  0x42   :  { %476 = vmatprep.subr.bf16.mxu0 %v544_v0 }
  0x45   :  { %477 = vmatpush3.bf16.msra.mxu0 %v513_v23 }
  0x46   :  { %478 = vmatprep.subr.bf16.mxu0 %v544_v0 }
  0x49   :  { %479 = vmatpush3.bf16.msra.mxu0 %v514_v24 }
  0x4a   :  { %480 = vmatprep.subr.bf16.mxu0 %v544_v0 }
  0x4d   :  { %481 = vmatpush3.bf16.msra.mxu0 %v515_v33 }
  0x4e   :  { %482 = vmatprep.subr.bf16.mxu0 %v544_v0 }
  0x51   :  { %483 = vmatpush3.bf16.msra.mxu0 %v516_v34 }
 0x107   :  { %v136_v26 = vpop.f32.mrb[0].mxu0 }
 0x108   :  { %v137_v27 = vadd.f32 %v374_v25, %v136_v26  ;;  %v446_v28 = vpop.f32.mrb[1].mxu0 }
 0x109   :  { %v139_v29 = vpop.f32.mrb[2].mxu0 }
 0x10a   :  { %v142_v30 = vmax.f32 %v137_v27, 0.0  ;;  %v447_v31 = vpop.f32.mrb[3].mxu0 }
 0x10c   :  { %v143_v32 = vpack.c.bf16 %v142_v30, %v142_v30 }
 0x10e   :  { %465 = vmatmul.mubr.bf16.vlgmr.msra.gmra.mrb[0].mxu1 %v143_v32 }
 0x1e1   :  { %v249_v36 = vpop.f32.mrb[0].mxu1 }
 0x1e2   :  { %v250_v37 = vadd.f32 %v383_v35, %v249_v36  ;;  %v466_v38 = vpop.f32.mrb[1].mxu1 }
 0x1e3   :  { %v252_v39 = vpop.f32.mrb[2].mxu1 }
 0x1e4   :  { %v255_v40 = vmax.f32 %v250_v37, 0.0  ;;  %v467_v41 = vpop.f32.mrb[3].mxu1 }
 0x1e6   :  { %v256_v42 = vpack.c.bf16 %v255_v40, %v255_v40 }
 0x1e8   :  { %485 = vmatmul.mubr.bf16.vlgmr.msra.gmra.mrb[4].mxu0 %v256_v42 }
 0x2bb   :  { %v362_v44 = vpop.f32.mrb[4].mxu0 }
 0x2bc   :  { %v363_v45 = vadd.f32 %v392_v43, %v362_v44  ;;  %v486_v46 = vpop.f32.mrb[5].mxu0 }
 0x2bd   :  { %v365_v47 = vpop.f32.mrb[6].mxu0 }
 0x2be   :  { %368 = vst [vmem:[%s626_s3] sm:$0xff] %v363_v45  ;;  %v487_v48 = vpop.f32.mrb[7].mxu0 }
 0x2bf   :  { %373 = vsyncpa [#allocation3], 1 }

</bundles_post_ra>
